<compile_context>
chip_gen: v7x
topology: tpu7x:2x2x1
jax: 0.10.0
libtpu: 0.0.40
codegen_flags: <defaults>
</compile_context>

<pallas_src>
import functools

import jax
import jax.numpy as jnp
from jax import lax
from jax.experimental import pallas as pl
from jax.experimental.pallas import tpu as pltpu


def self_attention_kernel(x_ref, wqkv_ref, wp_ref, bp_ref, o_ref, *, n_heads):
    # x_ref:    (1, T, C)   current batch element
    # wqkv_ref: (C, 3*C)    fused [Q|K|V] projection weights (head-major cols)
    # wp_ref:   (C, C)      output projection weight (in->out layout)
    # bp_ref:   (1, C)      output projection bias
    # o_ref:    (1, T, C)
    x = x_ref[0]                                  # (T, C)
    T, C = x.shape
    H = n_heads
    Hd = C // H
    scale = C ** (-0.5)                           # PyTorch uses full embed dim C

    # (1) Fused QKV projection: one wide, lane-dense MXU matmul.
    qkv = jnp.dot(x, wqkv_ref[...], preferred_element_type=jnp.float32)   # (T, 3C)
    q = qkv[:, 0 * C:1 * C] * scale               # fold scale into q once
    k = qkv[:, 1 * C:2 * C]
    v = qkv[:, 2 * C:3 * C]

    # Column->head selector (iota + compare only; built once, reused for Q/V).
    col = lax.broadcasted_iota(jnp.int32, (T, C), 1)

    def head_select(a, h):                        # keep only head-h columns
        lo = h * Hd
        return jnp.where((col >= lo) & (col < lo + Hd), a, 0.0)

    # (2) Scores for ALL heads with ONE matmul.  Row block h of q_bd holds q
    #     with only head-h columns kept, so q_bd @ k.T stacks the per-head
    #     (T, T) score blocks along sublanes.
    q_bd = jnp.concatenate([head_select(q, h) for h in range(H)], axis=0)  # (H*T, C)
    s = jnp.dot(q_bd, k.T, preferred_element_type=jnp.float32)             # (H*T, T)

    # (3) Causal mask + softmax: a single pass over the stacked scores.
    r16 = lax.broadcasted_iota(jnp.int32, (T, T), 0)
    c16 = lax.broadcasted_iota(jnp.int32, (T, T), 1)
    neg = jnp.where(r16 >= c16, 0.0, -jnp.inf).astype(jnp.float32)         # (T, T)
    s = s + jnp.concatenate([neg] * H, axis=0)                             # (H*T, T)
    m = jnp.max(s, axis=-1, keepdims=True)        # every row has >=1 valid entry
    p = jnp.exp(s - m)
    denom = jnp.sum(p, axis=-1, keepdims=True)
    p = p * pl.reciprocal(denom, approx=True)     # EUP slot -> ~free normalize
    # TODO(synk): attention-weight dropout omitted (eval-mode forward).

    # (4) Fold V through the output projection for ALL heads with ONE matmul:
    #     row block h of v_bd keeps only head-h columns of v, so
    #     (v_bd @ Wp) row block h == v_h @ Wp[h*Hd:(h+1)*Hd, :]  -> (T, C).
    v_bd = jnp.concatenate([head_select(v, h) for h in range(H)], axis=0)  # (H*T, C)
    vw = jnp.dot(v_bd, wp_ref[...], preferred_element_type=jnp.float32)    # (H*T, C)

    # (5) Per-head lane-dense accumulation: (T,T)@(T,C), 128 output lanes,
    #     straight into the f32 output accumulator (no head concat).
    acc = jnp.zeros((T, C), jnp.float32)
    for h in range(H):                            # H small & static -> unrolled
        lo = h * T
        acc = acc + jnp.dot(p[lo:lo + T, :], vw[lo:lo + T, :],
                            preferred_element_type=jnp.float32)            # (T, C)

    o_ref[0] = (acc + bp_ref[...]).astype(o_ref.dtype)


def self_attention(x, wq, wk, wv, w_proj, b_proj):
    B, T, C = x.shape
    H, _, Hd = wq.shape
    assert H * Hd == C

    # Fuse per-head weights into a single (C, 3C) matrix, head-major columns,
    # so q[:, h*Hd:(h+1)*Hd] == x @ wq[h] etc.
    def cat_heads(w):                              # (H, C, Hd) -> (C, H*Hd)
        return jnp.transpose(w, (1, 0, 2)).reshape(C, H * Hd)

    wqkv = jnp.concatenate(
        [cat_heads(wq), cat_heads(wk), cat_heads(wv)], axis=1)             # (C, 3C)

    kernel = functools.partial(self_attention_kernel, n_heads=H)
    const = lambda b: (0, 0)
    return pl.pallas_call(
        kernel,
        out_shape=jax.ShapeDtypeStruct((B, T, C), x.dtype),
        grid_spec=pltpu.PrefetchScalarGridSpec(
            num_scalar_prefetch=0,
            grid=(B,),                             # B=2 -> one step per TC on v7x
            in_specs=[
                pl.BlockSpec((1, T, C), lambda b: (b, 0, 0)),
                pl.BlockSpec((C, 3 * C), const),   # resident across grid steps
                pl.BlockSpec((C, C), const),
                pl.BlockSpec((1, C), const),
            ],
            out_specs=pl.BlockSpec((1, T, C), lambda b: (b, 0, 0)),
        ),
        compiler_params=pltpu.CompilerParams(
            dimension_semantics=("parallel",)),
    )(x, wqkv, w_proj, b_proj)


def reference(x, wq, wk, wv, w_proj, b_proj):
    """Pure-JAX reference mirroring the PyTorch forward (eval mode)."""
    B, T, C = x.shape
    H, _, Hd = wq.shape
    scale = C ** (-0.5)
    causal = jnp.tril(jnp.ones((T, T), dtype=bool))
    outs = []
    for h in range(H):
        q = x @ wq[h]
        k = x @ wk[h]
        v = x @ wv[h]
        wei = (q @ jnp.swapaxes(k, -2, -1)) * scale
        wei = jnp.where(causal, wei, -jnp.inf)
        wei = jax.nn.softmax(wei, axis=-1)
        outs.append(wei @ v)
    out = jnp.concatenate(outs, axis=-1)
    return out @ w_proj + b_proj[0]


if __name__ == "__main__":
    # GPTConfig: n_embed=128, n_heads=4, block_size=16. Small batch=2, T=16.
    B, T, C, H = 2, 16, 128, 4
    Hd = C // H

    key = jax.random.PRNGKey(0)
    kx, kq, kk, kv, kp, kb = jax.random.split(key, 6)
    x = jax.random.normal(kx, (B, T, C), dtype=jnp.float32)
    # deterministic synthetic params (nn.Linear-equivalent shapes, stored in->out)
    wq = jax.random.normal(kq, (H, C, Hd), dtype=jnp.float32) * 0.02
    wk = jax.random.normal(kk, (H, C, Hd), dtype=jnp.float32) * 0.02
    wv = jax.random.normal(kv, (H, C, Hd), dtype=jnp.float32) * 0.02
    w_proj = jax.random.normal(kp, (C, C), dtype=jnp.float32) * 0.02
    b_proj = (jax.random.normal(kb, (1, C), dtype=jnp.float32) * 0.02)

    out = self_attention(x, wq, wk, wv, w_proj, b_proj)
    out = jax.block_until_ready(out)

    ref = reference(x, wq, wk, wv, w_proj, b_proj)
    assert out.shape == (B, T, C)
    # 2e-3 tolerance: allows for the EUP approximate-reciprocal softmax denom.
    assert jnp.allclose(out, ref, atol=2e-3, rtol=2e-3), "mismatch vs reference"

    print("KERNEL_OK")
</pallas_src>

<mosaic_0001>
module attributes {stable_mosaic.version = 11 : i64} {
  func.func @self_attention_kernel(%arg0: i32, %arg1: memref<1x16x128xf32, #tpu.memory_space<vmem>>, %arg2: memref<128x384xf32, #tpu.memory_space<vmem>>, %arg3: memref<128x128xf32, #tpu.memory_space<vmem>>, %arg4: memref<1x128xf32, #tpu.memory_space<vmem>>, %arg5: memref<1x16x128xf32, #tpu.memory_space<vmem>>) attributes {dimension_semantics = [#tpu.dimension_semantics<parallel>], iteration_bounds = array<i64: 2>, scalar_prefetch = 0 : i64, scratch_operands = 0 : i64, tpu.core_type = #tpu.core_type<tc>, window_params = [{transform_indices = @transform_0, window_bounds = array<i64: 1, 16, 128>}, {pipeline_mode = #tpu.pipeline_mode<synchronous>, transform_indices = @transform_1, window_bounds = array<i64: 128, 384>}, {pipeline_mode = #tpu.pipeline_mode<synchronous>, transform_indices = @transform_2, window_bounds = array<i64: 128, 128>}, {pipeline_mode = #tpu.pipeline_mode<synchronous>, transform_indices = @transform_3, window_bounds = array<i64: 1, 128>}, {transform_indices = @transform_4, window_bounds = array<i64: 1, 16, 128>}]} {
    %c0 = arith.constant 0 : index
    %c0_0 = arith.constant 0 : index
    %c0_1 = arith.constant 0 : index
    %0 = vector.load %arg1[%c0, %c0_0, %c0_1] : memref<1x16x128xf32, #tpu.memory_space<vmem>>, vector<1x16x128xf32>
    %1 = vector.shape_cast %0 : vector<1x16x128xf32> to vector<16x128xf32>
    %c0_2 = arith.constant 0 : index
    %c0_3 = arith.constant 0 : index
    %2 = vector.load %arg2[%c0_2, %c0_3] : memref<128x384xf32, #tpu.memory_space<vmem>>, vector<128x384xf32>
    %cst = arith.constant dense<0.000000e+00> : vector<16x384xf32>
    %3 = tpu.matmul %1, %2, %cst {dimension_numbers = #tpu.dot_dimension_numbers<[1], [0], [0], [1], [0, 0, 1, 1], [], []>} : vector<16x128xf32>, vector<128x384xf32>, vector<16x384xf32> -> vector<16x384xf32>
    %4 = vector.extract_strided_slice %3 {offsets = [0, 0], sizes = [16, 128], strides = [1, 1]} : vector<16x384xf32> to vector<16x128xf32>
    %cst_4 = arith.constant 0.0883883461 : f32
    %5 = vector.broadcast %cst_4 : f32 to vector<16x128xf32>
    %6 = arith.mulf %4, %5 : vector<16x128xf32>
    %7 = vector.extract_strided_slice %3 {offsets = [0, 128], sizes = [16, 128], strides = [1, 1]} : vector<16x384xf32> to vector<16x128xf32>
    %8 = vector.extract_strided_slice %3 {offsets = [0, 256], sizes = [16, 128], strides = [1, 1]} : vector<16x384xf32> to vector<16x128xf32>
    %9 = tpu.iota {dimensions = array<i32: 1>} : vector<16x128xi32>
    %c0_i32 = arith.constant 0 : i32
    %10 = vector.broadcast %c0_i32 : i32 to vector<16x128xi32>
    %11 = arith.cmpi sge, %9, %10 : vector<16x128xi32>
    %c32_i32 = arith.constant 32 : i32
    %12 = vector.broadcast %c32_i32 : i32 to vector<16x128xi32>
    %13 = arith.cmpi slt, %9, %12 : vector<16x128xi32>
    %14 = arith.andi %11, %13 : vector<16x128xi1>
    %cst_5 = arith.constant 0.000000e+00 : f32
    %15 = vector.broadcast %cst_5 : f32 to vector<16x128xf32>
    %16 = arith.select %14, %6, %15 : vector<16x128xi1>, vector<16x128xf32>
    %c32_i32_6 = arith.constant 32 : i32
    %17 = vector.broadcast %c32_i32_6 : i32 to vector<16x128xi32>
    %18 = arith.cmpi sge, %9, %17 : vector<16x128xi32>
    %c64_i32 = arith.constant 64 : i32
    %19 = vector.broadcast %c64_i32 : i32 to vector<16x128xi32>
    %20 = arith.cmpi slt, %9, %19 : vector<16x128xi32>
    %21 = arith.andi %18, %20 : vector<16x128xi1>
    %cst_7 = arith.constant 0.000000e+00 : f32
    %22 = vector.broadcast %cst_7 : f32 to vector<16x128xf32>
    %23 = arith.select %21, %6, %22 : vector<16x128xi1>, vector<16x128xf32>
    %c64_i32_8 = arith.constant 64 : i32
    %24 = vector.broadcast %c64_i32_8 : i32 to vector<16x128xi32>
    %25 = arith.cmpi sge, %9, %24 : vector<16x128xi32>
    %c96_i32 = arith.constant 96 : i32
    %26 = vector.broadcast %c96_i32 : i32 to vector<16x128xi32>
    %27 = arith.cmpi slt, %9, %26 : vector<16x128xi32>
    %28 = arith.andi %25, %27 : vector<16x128xi1>
    %cst_9 = arith.constant 0.000000e+00 : f32
    %29 = vector.broadcast %cst_9 : f32 to vector<16x128xf32>
    %30 = arith.select %28, %6, %29 : vector<16x128xi1>, vector<16x128xf32>
    %c96_i32_10 = arith.constant 96 : i32
    %31 = vector.broadcast %c96_i32_10 : i32 to vector<16x128xi32>
    %32 = arith.cmpi sge, %9, %31 : vector<16x128xi32>
    %c128_i32 = arith.constant 128 : i32
    %33 = vector.broadcast %c128_i32 : i32 to vector<16x128xi32>
    %34 = arith.cmpi slt, %9, %33 : vector<16x128xi32>
    %35 = arith.andi %32, %34 : vector<16x128xi1>
    %cst_11 = arith.constant 0.000000e+00 : f32
    %36 = vector.broadcast %cst_11 : f32 to vector<16x128xf32>
    %37 = arith.select %35, %6, %36 : vector<16x128xi1>, vector<16x128xf32>
    %38 = tpu.concatenate %16, %23, %30, %37 in 0 : vector<16x128xf32>, vector<16x128xf32>, vector<16x128xf32>, vector<16x128xf32> -> vector<64x128xf32>
    %39 = tpu.transpose %7, [1, 0] : vector<16x128xf32> -> vector<128x16xf32>
    %cst_12 = arith.constant dense<0.000000e+00> : vector<64x16xf32>
    %40 = tpu.matmul %38, %39, %cst_12 {dimension_numbers = #tpu.dot_dimension_numbers<[1], [0], [0], [1], [0, 0, 1, 1], [], []>} : vector<64x128xf32>, vector<128x16xf32>, vector<64x16xf32> -> vector<64x16xf32>
    %41 = tpu.iota {dimensions = array<i32: 0>} : vector<16x16xi32>
    %42 = tpu.iota {dimensions = array<i32: 1>} : vector<16x16xi32>
    %43 = arith.cmpi sge, %41, %42 : vector<16x16xi32>
    %cst_13 = arith.constant 0.000000e+00 : f32
    %cst_14 = arith.constant 0xFF800000 : f32
    %44 = vector.broadcast %cst_13 : f32 to vector<16x16xf32>
    %45 = vector.broadcast %cst_14 : f32 to vector<16x16xf32>
    %46 = arith.select %43, %44, %45 : vector<16x16xi1>, vector<16x16xf32>
    %47 = tpu.concatenate %46, %46, %46, %46 in 0 : vector<16x16xf32>, vector<16x16xf32>, vector<16x16xf32>, vector<16x16xf32> -> vector<64x16xf32>
    %48 = arith.addf %40, %47 : vector<64x16xf32>
    %cst_15 = arith.constant dense<0xFF800000> : vector<64xf32>
    %49 = vector.multi_reduction <maximumf>, %48, %cst_15 [1] : vector<64x16xf32> to vector<64xf32>
    %50 = vector.shape_cast %49 : vector<64xf32> to vector<64x1xf32>
    %51 = vector.broadcast %50 : vector<64x1xf32> to vector<64x16xf32>
    %52 = arith.subf %48, %51 : vector<64x16xf32>
    %53 = math.exp %52 : vector<64x16xf32>
    %cst_16 = arith.constant dense<0.000000e+00> : vector<64xf32>
    %54 = vector.multi_reduction <add>, %53, %cst_16 [1] : vector<64x16xf32> to vector<64xf32>
    %55 = vector.shape_cast %54 : vector<64xf32> to vector<64x1xf32>
    %56 = tpu.reciprocal %55 {approx = true} : vector<64x1xf32> -> vector<64x1xf32>
    %57 = vector.broadcast %56 : vector<64x1xf32> to vector<64x16xf32>
    %58 = arith.mulf %53, %57 : vector<64x16xf32>
    %c0_i32_17 = arith.constant 0 : i32
    %59 = vector.broadcast %c0_i32_17 : i32 to vector<16x128xi32>
    %60 = arith.cmpi sge, %9, %59 : vector<16x128xi32>
    %c32_i32_18 = arith.constant 32 : i32
    %61 = vector.broadcast %c32_i32_18 : i32 to vector<16x128xi32>
    %62 = arith.cmpi slt, %9, %61 : vector<16x128xi32>
    %63 = arith.andi %60, %62 : vector<16x128xi1>
    %cst_19 = arith.constant 0.000000e+00 : f32
    %64 = vector.broadcast %cst_19 : f32 to vector<16x128xf32>
    %65 = arith.select %63, %8, %64 : vector<16x128xi1>, vector<16x128xf32>
    %c32_i32_20 = arith.constant 32 : i32
    %66 = vector.broadcast %c32_i32_20 : i32 to vector<16x128xi32>
    %67 = arith.cmpi sge, %9, %66 : vector<16x128xi32>
    %c64_i32_21 = arith.constant 64 : i32
    %68 = vector.broadcast %c64_i32_21 : i32 to vector<16x128xi32>
    %69 = arith.cmpi slt, %9, %68 : vector<16x128xi32>
    %70 = arith.andi %67, %69 : vector<16x128xi1>
    %cst_22 = arith.constant 0.000000e+00 : f32
    %71 = vector.broadcast %cst_22 : f32 to vector<16x128xf32>
    %72 = arith.select %70, %8, %71 : vector<16x128xi1>, vector<16x128xf32>
    %c64_i32_23 = arith.constant 64 : i32
    %73 = vector.broadcast %c64_i32_23 : i32 to vector<16x128xi32>
    %74 = arith.cmpi sge, %9, %73 : vector<16x128xi32>
    %c96_i32_24 = arith.constant 96 : i32
    %75 = vector.broadcast %c96_i32_24 : i32 to vector<16x128xi32>
    %76 = arith.cmpi slt, %9, %75 : vector<16x128xi32>
    %77 = arith.andi %74, %76 : vector<16x128xi1>
    %cst_25 = arith.constant 0.000000e+00 : f32
    %78 = vector.broadcast %cst_25 : f32 to vector<16x128xf32>
    %79 = arith.select %77, %8, %78 : vector<16x128xi1>, vector<16x128xf32>
    %c96_i32_26 = arith.constant 96 : i32
    %80 = vector.broadcast %c96_i32_26 : i32 to vector<16x128xi32>
    %81 = arith.cmpi sge, %9, %80 : vector<16x128xi32>
    %c128_i32_27 = arith.constant 128 : i32
    %82 = vector.broadcast %c128_i32_27 : i32 to vector<16x128xi32>
    %83 = arith.cmpi slt, %9, %82 : vector<16x128xi32>
    %84 = arith.andi %81, %83 : vector<16x128xi1>
    %cst_28 = arith.constant 0.000000e+00 : f32
    %85 = vector.broadcast %cst_28 : f32 to vector<16x128xf32>
    %86 = arith.select %84, %8, %85 : vector<16x128xi1>, vector<16x128xf32>
    %87 = tpu.concatenate %65, %72, %79, %86 in 0 : vector<16x128xf32>, vector<16x128xf32>, vector<16x128xf32>, vector<16x128xf32> -> vector<64x128xf32>
    %c0_29 = arith.constant 0 : index
    %c0_30 = arith.constant 0 : index
    %88 = vector.load %arg3[%c0_29, %c0_30] : memref<128x128xf32, #tpu.memory_space<vmem>>, vector<128x128xf32>
    %cst_31 = arith.constant dense<0.000000e+00> : vector<64x128xf32>
    %89 = tpu.matmul %87, %88, %cst_31 {dimension_numbers = #tpu.dot_dimension_numbers<[1], [0], [0], [1], [0, 0, 1, 1], [], []>} : vector<64x128xf32>, vector<128x128xf32>, vector<64x128xf32> -> vector<64x128xf32>
    %cst_32 = arith.constant 0.000000e+00 : f32
    %90 = vector.broadcast %cst_32 : f32 to vector<16x128xf32>
    %91 = vector.extract_strided_slice %58 {offsets = [0, 0], sizes = [16, 16], strides = [1, 1]} : vector<64x16xf32> to vector<16x16xf32>
    %92 = vector.extract_strided_slice %89 {offsets = [0, 0], sizes = [16, 128], strides = [1, 1]} : vector<64x128xf32> to vector<16x128xf32>
    %cst_33 = arith.constant dense<0.000000e+00> : vector<16x128xf32>
    %93 = tpu.matmul %91, %92, %cst_33 {dimension_numbers = #tpu.dot_dimension_numbers<[1], [0], [0], [1], [0, 0, 1, 1], [], []>} : vector<16x16xf32>, vector<16x128xf32>, vector<16x128xf32> -> vector<16x128xf32>
    %94 = arith.addf %90, %93 : vector<16x128xf32>
    %95 = vector.extract_strided_slice %58 {offsets = [16, 0], sizes = [16, 16], strides = [1, 1]} : vector<64x16xf32> to vector<16x16xf32>
    %96 = vector.extract_strided_slice %89 {offsets = [16, 0], sizes = [16, 128], strides = [1, 1]} : vector<64x128xf32> to vector<16x128xf32>
    %cst_34 = arith.constant dense<0.000000e+00> : vector<16x128xf32>
    %97 = tpu.matmul %95, %96, %cst_34 {dimension_numbers = #tpu.dot_dimension_numbers<[1], [0], [0], [1], [0, 0, 1, 1], [], []>} : vector<16x16xf32>, vector<16x128xf32>, vector<16x128xf32> -> vector<16x128xf32>
    %98 = arith.addf %94, %97 : vector<16x128xf32>
    %99 = vector.extract_strided_slice %58 {offsets = [32, 0], sizes = [16, 16], strides = [1, 1]} : vector<64x16xf32> to vector<16x16xf32>
    %100 = vector.extract_strided_slice %89 {offsets = [32, 0], sizes = [16, 128], strides = [1, 1]} : vector<64x128xf32> to vector<16x128xf32>
    %cst_35 = arith.constant dense<0.000000e+00> : vector<16x128xf32>
    %101 = tpu.matmul %99, %100, %cst_35 {dimension_numbers = #tpu.dot_dimension_numbers<[1], [0], [0], [1], [0, 0, 1, 1], [], []>} : vector<16x16xf32>, vector<16x128xf32>, vector<16x128xf32> -> vector<16x128xf32>
    %102 = arith.addf %98, %101 : vector<16x128xf32>
    %103 = vector.extract_strided_slice %58 {offsets = [48, 0], sizes = [16, 16], strides = [1, 1]} : vector<64x16xf32> to vector<16x16xf32>
    %104 = vector.extract_strided_slice %89 {offsets = [48, 0], sizes = [16, 128], strides = [1, 1]} : vector<64x128xf32> to vector<16x128xf32>
    %cst_36 = arith.constant dense<0.000000e+00> : vector<16x128xf32>
    %105 = tpu.matmul %103, %104, %cst_36 {dimension_numbers = #tpu.dot_dimension_numbers<[1], [0], [0], [1], [0, 0, 1, 1], [], []>} : vector<16x16xf32>, vector<16x128xf32>, vector<16x128xf32> -> vector<16x128xf32>
    %106 = arith.addf %102, %105 : vector<16x128xf32>
    %c0_37 = arith.constant 0 : index
    %c0_38 = arith.constant 0 : index
    %107 = vector.load %arg4[%c0_37, %c0_38] : memref<1x128xf32, #tpu.memory_space<vmem>>, vector<1x128xf32>
    %108 = vector.broadcast %107 : vector<1x128xf32> to vector<16x128xf32>
    %109 = arith.addf %106, %108 : vector<16x128xf32>
    %c0_39 = arith.constant 0 : index
    %c0_40 = arith.constant 0 : index
    %c0_41 = arith.constant 0 : index
    %110 = vector.load %arg5[%c0_39, %c0_40, %c0_41] : memref<1x16x128xf32, #tpu.memory_space<vmem>>, vector<1x16x128xf32>
    %111 = vector.shape_cast %110 : vector<1x16x128xf32> to vector<16x128xf32>
    %112 = vector.shape_cast %109 : vector<16x128xf32> to vector<1x16x128xf32>
    tpu.vector_store %arg5[%c0_39, %c0_40, %c0_41], %112 {strides = array<i32>} : memref<1x16x128xf32, #tpu.memory_space<vmem>>, vector<1x16x128xf32>,
    return
  }
  func.func @transform_0(%arg0: i32) -> (i32, i32, i32) {
    %c0_i32 = arith.constant 0 : i32
    %c0_i32_0 = arith.constant 0 : i32
    %c0_i32_1 = arith.constant 0 : i32
    return %arg0, %c0_i32, %c0_i32_0 : i32, i32, i32
  }
  func.func @transform_1(%arg0: i32) -> (i32, i32) {
    %c0_i32 = arith.constant 0 : i32
    %c0_i32_0 = arith.constant 0 : i32
    %c0_i32_1 = arith.constant 0 : i32
    return %c0_i32, %c0_i32_0 : i32, i32
  }
  func.func @transform_2(%arg0: i32) -> (i32, i32) {
    %c0_i32 = arith.constant 0 : i32
    %c0_i32_0 = arith.constant 0 : i32
    %c0_i32_1 = arith.constant 0 : i32
    return %c0_i32, %c0_i32_0 : i32, i32
  }
  func.func @transform_3(%arg0: i32) -> (i32, i32) {
    %c0_i32 = arith.constant 0 : i32
    %c0_i32_0 = arith.constant 0 : i32
    %c0_i32_1 = arith.constant 0 : i32
    return %c0_i32, %c0_i32_0 : i32, i32
  }
  func.func @transform_4(%arg0: i32) -> (i32, i32, i32) {
    %c0_i32 = arith.constant 0 : i32
    %c0_i32_0 = arith.constant 0 : i32
    %c0_i32_1 = arith.constant 0 : i32
    return %arg0, %c0_i32, %c0_i32_0 : i32, i32, i32
  }
}

</mosaic_0001>

<bundles_post_ra>
// kernel: tpu_custom_call.1
= control target key start
LH: loop header
LB: loop body
LE: loop exit
PB: predicated region body
PF: predicated region fallthrough
CT: control target
= control target key end

     0   :  { %9 = vsyncpa [#allocation3], 0  ;;  %s2247_s0 = inlined_call_operand.hbm [shape: f32[2,16,128], index: 0, kind: input, shape index: {}]   ;;  %s2248_s1 = inlined_call_operand.hbm [shape: f32[128,384], index: 1, kind: input, shape index: {}]   ;;  %s2249_s2 = inlined_call_operand.hbm [shape: f32[128,128], index: 2, kind: input, shape index: {}]   ;;  %s2250_s3 = inlined_call_operand.vmem [shape: f32[1,128], index: 3, kind: input, shape index: {}]   ;;  %s2251_s4 = inlined_call_operand.hbm [shape: f32[2,16,128], index: 4, kind: output, shape index: {}]  }
   0x1   :  { %11 = vsyncpa [#allocation3 + $0x1], 0 }
   0x2   :  { %12 = vsyncpa [#allocation6], 0 }
   0x3   :  { %13 = vsyncpa [#allocation4], 0 }
   0x4   :  { %15 = vsyncpa [#allocation4 + $0x1], 0  ;;  %s1906_s15 = smov 0   ;;  %s1908_s16 = smov 0  }
   0x5   :  { %s1910_s17 = smov 0   ;;  %s1912_s18 = smov 0  }
   0x6 LB: > { %s1927_s19 = sadd.s32 4294967295, %s1867_s18   ;;  %s1246_s20 = sadd.s32 4294967294, %s1867_s18   ;;  %s1867_s18 = sphi %s1912_s18, %s2275_s18   ;;  %s1863_s17 = sphi %s1910_s17, %s2274_s17   ;;  %s1859_s16 = sphi %s1908_s16, %s2273_s16   ;;  %s1855_s15 = sphi %s1906_s15, %s2272_s15  }
   0x7   : > { %p41_p0 = scmp.ne.s32.totalorder %s1859_s16, %s1855_s15  ;;  %p2252_p1 = scmp.eq.s32.totalorder %s1927_s19, 0 }
   0x8   : > { %p134_p3 = scmp.eq.s32.totalorder %s1246_s20, 1  ;;  %p1247_p5 = scmp.ge.s32.totalorder %s1867_s18, 1 }
   0x9   : > { %p1936_p4 = por %p2252_p1, %p41_p0  ;;  %p141_p7 = scmp.lt.s32.totalorder %s1867_s18, 3 }
   0xa   : > { %p1941_p6 = por %p134_p3, %p41_p0  ;;  %s1869_s24 = smov [#allocation5]  }
   0xb   : > { %s2255_s21 = scalar_select %p1936_p4, 1, 0 }
   0xc   : > { %s2256_s22 = scalar_select %p1941_p6, 1, 0 }
   0xd   : > { %p1946_p8 = pnand %p1247_p5, %p141_p7  ;;  %s153_s25 = sshll.u32 %s1869_s24, 4  ;;  %s1950_s25 = int_to_ptr.vmem [resolvable:$true] %s153_s25 }
   0xe   : > { %s1870_s27 = smov [#allocation7]   ;;  %s1711_s5 = scalar_lea.hbm %s2248_s1, 6144 }
   0xf   : > { %p1616_p9 = pneg %p1946_p8  ;;  %s166_s28 = sshll.u32 %s1870_s27, 4  ;;  %s1961_s28 = int_to_ptr.vmem [resolvable:$true] %s166_s28 }
  0x10   : > { %p1712_p12 = scmp.ne.s32.totalorder %s2248_s1, %s1711_s5  ;;  %p1718_p5 = scmp.lt.u32.totalorder %s1711_s5, %s2248_s1 }
  0x11   : > { %p1957_p11 = pnand %p1616_p9, %p2252_p1 }
  0x13   : > { %p1713_p13 = pneg %p1957_p11 }
  0x15   : > { %p1714_p0 = pnand %p1713_p13, %p1712_p12 }
  0x17   : > { %p1715_p3 = pneg %p1714_p0 }
  0x19   : > { %p1720_p7 = pnand %p1718_p5, %p1715_p3 }
  0x1b   : > { %1723 = shalt.err (!%p1720_p7)
}
  0x1c   : > { %s1724_s10 = scalar_lea.vmem %s1950_s25, 6144  ;;  %p1732_p2 = scmp.lt.s32.totalorder %s1950_s25, %s1950_s25 }
  0x1d   : > { %p1725_p9 = scmp.ne.s32.totalorder %s1950_s25, %s1724_s10  ;;  %p1733_p12 = scmp.lt.s32.totalorder %s1724_s10, %s1724_s10 }
  0x1f   : > { %p1727_p10 = pnand %p1725_p9, %p1713_p13  ;;  %p1734_p0 = por %p1733_p12, %p1732_p2 }
  0x21   : > { %p1728_p1 = pneg %p1727_p10 }
  0x23   : > { %p1735_p6 = pnand %p1734_p0, %p1728_p1 }
  0x25   : > { %1738 = shalt.err (!%p1735_p6)
}
  0x26   : > { %s1871_s11 = smov 384   ;;  %s1872_s12 = smov 24  }
  0x27   : > { %1619 = dma.hbm_to_vmem [thread:$0]  (!%p1957_p11), %s2248_s1, 6144, %s1950_s25, [#allocation6], %s1871_s11, %s1871_s11, %s1872_s12  }
  0x28   : > { %s1739_s27 = scalar_lea.hbm %s2249_s2, 2048 }
  0x29   : > { %p1740_p2 = scmp.ne.s32.totalorder %s2249_s2, %s1739_s27  ;;  %p1746_p10 = scmp.lt.u32.totalorder %s1739_s27, %s2249_s2 }
  0x2b   : > { %p1742_p1 = pnand %p1740_p2, %p1713_p13 }
  0x2d   : > { %p1743_p6 = pneg %p1742_p1 }
  0x2f   : > { %p1748_p3 = pnand %p1746_p10, %p1743_p6 }
  0x31   : > { %1751 = shalt.err (!%p1748_p3)
}
  0x32   : > { %s1752_s25 = scalar_lea.vmem %s1961_s28, 2048  ;;  %p1760_p12 = scmp.lt.s32.totalorder %s1961_s28, %s1961_s28 }
  0x33   : > { %p1753_p5 = scmp.ne.s32.totalorder %s1961_s28, %s1752_s25  ;;  %p1761_p0 = scmp.lt.s32.totalorder %s1752_s25, %s1752_s25 }
  0x35   : > { %p1755_p7 = pnand %p1753_p5, %p1713_p13  ;;  %p1762_p2 = por %p1761_p0, %p1760_p12 }
  0x37   : > { %p1756_p9 = pneg %p1755_p7 }
  0x39   : > { %p1763_p1 = pnand %p1762_p2, %p1756_p9 }
  0x3b   : > { %1766 = shalt.err (!%p1763_p1)
}
  0x3c   : > { %s1873_s7 = smov 128   ;;  %s1874_s8 = smov 8  }
  0x3d   : > { %1622 = dma.hbm_to_vmem [thread:$0]  (!%p1957_p11), %s2249_s2, 2048, %s1961_s28, [#allocation6], %s1873_s7, %s1873_s7, %s1874_s8  }
  0x3e   : > { %s2019_s11 = sadd.s32 1, %s1867_s18   ;;  %s28_s13 = sadd.s32 1, %s1863_s17 }
  0x3f   : > { %s25_s12 = ssub.s32 %s1867_s18, %s2019_s11  ;;  %p35_p6 = scmp.ne.s32.totalorder %s1863_s17, %s1859_s16 }
  0x40   : > { %p26_p13 = scmp.eq.s32.totalorder %s25_s12, 0  ;;  %p36_p10 = scmp.eq.s32.totalorder %s1867_s18, 0 }
  0x41   : > { %p2259_p5 = scmp.eq.s32.totalorder %s1927_s19, 1  ;;  %p1633_p9 = scmp.lt.s32.totalorder %s1867_s18, 2 }
  0x42   : > { %s2028_s14 = scalar_select %p26_p13, %s1863_s17, %s28_s13  }
  0x43   : > { %p37_p3 = por %p36_p10, %p35_p6  ;;  %p2032_p7 = por %p2259_p5, %p35_p6 }
  0x44   : > { %s183_s20 = sand.u32 1, %s1863_s17   ;;  %s1289_s28 = sshll.u32 %s1867_s18, 8 }
  0x45   : > { %s2260_s26 = scalar_select %p2032_p7, 1, 0 }
  0x46   : > { %s1251_s24 = sshll.u32 %s183_s20, 4  ;;  %s2042_s30 = scalar_lea.hbm %s2247_s0, %s1289_s28 }
  0x47   : > { %s187_s5 = scalar_lea.vmem [#allocation2], %s1251_s24  ;;  %p2046_p11 = pnand %p1633_p9, %p37_p3 }
  0x48   : > { %s194_s6 = sshll.u32 %s187_s5, 4  ;;  %s2050_s9 = scalar_lea.sflag [#allocation3], %s183_s20  ;;  %s2044_s6 = int_to_ptr.vmem [resolvable:$true] %s194_s6 }
  0x49   : > { %s1767_s10 = scalar_lea.hbm %s2042_s30, 256  ;;  %p1769_p0 = pneg %p2046_p11 }
  0x4a   : > { %p1768_p12 = scmp.ne.s32.totalorder %s2042_s30, %s1767_s10  ;;  %s1772_s24 = scalar_lea.hbm %s2247_s0, 512 }
  0x4b   : > { %p1773_p13 = scmp.lt.u32.totalorder %s2042_s30, %s2247_s0  ;;  %p1774_p6 = scmp.lt.u32.totalorder %s1772_s24, %s1767_s10 }
  0x4c   : > { %p1770_p2 = pnand %p1769_p0, %p1768_p12  ;;  %p1776_p3 = scmp.lt.u32.totalorder %s1767_s10, %s2042_s30 }
  0x4d   : > { %p1775_p10 = por %p1774_p6, %p1773_p13 }
  0x4e   : > { %p1771_p1 = pneg %p1770_p2 }
  0x4f   : > { %p1777_p5 = por %p1776_p3, %p1775_p10 }
  0x51   : > { %p1778_p9 = pnand %p1777_p5, %p1771_p1 }
  0x53   : > { %1781 = shalt.err (!%p1778_p9)
}
  0x54   : > { %s1782_s20 = scalar_lea.vmem %s2044_s6, 256  ;;  %s1875_s29 = smov [#allocation2]  }
  0x55   : > { %p1783_p12 = scmp.ne.s32.totalorder %s2044_s6, %s1782_s20  ;;  %s1787_s5 = sshll.u32 %s1875_s29, 4  ;;  %s1788_s5 = int_to_ptr.vmem [resolvable:$false] %s1787_s5 }
  0x56   : > { %s1789_s12 = scalar_lea.vmem %s1788_s5, 512  ;;  %p1790_p4 = scmp.lt.s32.totalorder %s2044_s6, %s1788_s5 }
  0x57   : > { %p1785_p2 = pnand %p1783_p12, %p1769_p0  ;;  %p1791_p13 = scmp.lt.s32.totalorder %s1789_s12, %s1782_s20 }
  0x59   : > { %p1786_p7 = pneg %p1785_p2  ;;  %p1792_p6 = por %p1791_p13, %p1790_p4 }
  0x5b   : > { %p1793_p10 = pnand %p1792_p6, %p1786_p7 }
  0x5d   : > { %1796 = shalt.err (!%p1793_p10)
}
  0x5e   : > { %1626 = dma.hbm_to_vmem [thread:$0]  (!%p2046_p11), %s2042_s30, 256, %s2044_s6, %s2050_s9, %s1873_s7, %s1873_s7, %s1874_s8  }
  0x5f   : > { %206 = sbr.rel (%p1946_p8) target bundleno = 1160 (0x488), region = 36  ;;  %s2084_s10 = sand.u32 (!%p1946_p8), 1, %s1859_s16  }
  0x60   : > { %s1255_s13 = sshll.u32 (!%p1946_p8), %s2084_s10, 4  ;;  %s209_s24 = scalar_lea.sflag (!%p1946_p8), [#allocation3], %s2084_s10 }
  0x61   : > { %s2090_s25 = scalar_lea.vmem (!%p1946_p8), [#allocation2], %s1255_s13  ;;  %p2262_p4 = scmp.ne.s32.totalorder (!%p1946_p8), %s2255_s21, 0 }
  0x66   : > { %1842 = dma.done.wait (%p2262_p4), %s209_s24, 256  }
  0x67   : > { %1844 = vsyncadd (%p2262_p4), %s209_s24, 4294967040  ;;  %p2263_p7 = scmp.eq.s32.totalorder %s1927_s19, 0 }
  0x69   : > { %1846 = dma.done.wait (%p2263_p7), [#allocation6], 8192   ;;  %p2264_p8 = pmov %p2263_p7 }
  0x6a   : > { %v1876_v0 = vmov 0.0   ;;  %v248_v1 = vld [vmem:[#allocation5 + $0x8] sm:$0xff]  ;;  %v251_v2 = vld [vmem:[#allocation5 + $0x20] sm:$0xff]  ;;  %v250_v5 = vld [vmem:[#allocation5 + $0x18] sm:$0xff]  ;;  %vm583_vm10 = vcmask 130048   ;;  %s244_s21 = scalar_lea.vmem [#allocation8], %s1255_s13 }
  0x6b   : > { %1848 = vsyncadd (%p2264_p8), [#allocation6], 4294959104  ;;  %359 = vmatprep.mubr.f32.mxu0 %v1876_v0  ;;  %v247_v3 = vld [vmem:[#allocation5] sm:$0xff]  ;;  %v1482_v4 = vpack.c.bf16 %v251_v2, %v248_v1  ;;  %v254_v6 = vld [vmem:[#allocation5 + $0x38] sm:$0xff]  ;;  %s1154_s23 = sshll.u32 %s244_s21, 4  ;;  %s1290_s30 = sshll.u32 %s1927_s19, 8  ;;  %s2198_s23 = int_to_ptr.vmem [resolvable:$true] %s1154_s23 }
  0x6c   : > { %v257_v7 = vld [vmem:[#allocation5 + $0x50] sm:$0xff]  ;;  %v1484_v8 = vpack.c.bf16 %v250_v5, %v247_v3  ;;  %v256_v11 = vld [vmem:[#allocation5 + $0x48] sm:$0xff]  ;;  %v263_v13 = vld [vmem:[#allocation5 + $0x80] sm:$0xff]  ;;  %s2203_s28 = scalar_lea.hbm %s2251_s4, %s1290_s30  ;;  %s1141_s27 = scalar_lea.sflag [#allocation4], %s2084_s10 }
  0x6d   : > { %v1486_v9 = vpack.c.bf16 %v257_v7, %v254_v6  ;;  %v253_v10 = vld [vmem:[#allocation5 + $0x30] sm:$0xff]  ;;  %v260_v12 = vld [vmem:[#allocation5 + $0x68] sm:$0xff]  ;;  %1483 = vmatprep.subr.bf16.mxu0 %v1482_v4  ;;  %v259_v16 = vld [vmem:[#allocation5 + $0x60] sm:$0xff]  ;;  %s1797_s20 = scalar_lea.vmem %s2198_s23, 256  ;;  %p2269_p0 = scmp.ne.s32.totalorder %s2260_s26, 0 }
  0x6e   : > { %1485 = vmatpush1.bf16.msra.mxu0 %v1484_v8  ;;  %v1488_v14 = vpack.c.bf16 %v256_v11, %v253_v10  ;;  %v1490_v15 = vpack.c.bf16 %v263_v13, %v260_v12  ;;  %v262_v17 = vld [vmem:[#allocation5 + $0x78] sm:$0xff]  ;;  %v269_v19 = vld [vmem:[#allocation5 + $0xb0] sm:$0xff]  ;;  %v268_v23 = vld [vmem:[#allocation5 + $0xa8] sm:$0xff]  ;;  %v449_v11 = vlaneseq  ;;  %p1798_p11 = scmp.ne.s32.totalorder %s2198_s23, %s1797_s20  ;;  %s1878_s19 = smov [#allocation8]  }
  0x6f   : > { %1487 = vmatprep.subr.bf16.mxu0 %v1486_v9  ;;  %v266_v18 = vld [vmem:[#allocation5 + $0x98] sm:$0xff]  ;;  %v1492_v20 = vpack.c.bf16 %v262_v17, %v259_v16  ;;  %v265_v22 = vld [vmem:[#allocation5 + $0x90] sm:$0xff]  ;;  %v272_v24 = vld [vmem:[#allocation5 + $0xc8] sm:$0xff]  ;;  %s1801_s29 = sshll.u32 %s1878_s19, 4  ;;  %s1802_s29 = int_to_ptr.vmem [resolvable:$false] %s1801_s29 }
  0x70   : > { %v1494_v21 = vpack.c.bf16 %v269_v19, %v266_v18  ;;  %v275_v25 = vld [vmem:[#allocation5 + $0xe0] sm:$0xff]  ;;  %v1496_v27 = vpack.c.bf16 %v268_v23, %v265_v22  ;;  %v274_v30 = vld [vmem:[#allocation5 + $0xd8] sm:$0xff]  ;;  %v281_v32 = vld [vmem:[#allocation5 + $0x110] sm:$0xff]  ;;  %v2105_v12 = vand.u32 127, %v449_v11  ;;  %p1799_p1 = pnand %p1798_p11, %p2269_p0  ;;  %s1803_s5 = scalar_lea.vmem %s1802_s29, 512 }
  0x71   : > { %v245_v26 = vld [vmem:[%s2090_s25] sm:$0xff]  ;;  %v1498_v28 = vpack.c.bf16 %v275_v25, %v272_v24  ;;  %v278_v31 = vld [vmem:[#allocation5 + $0xf8] sm:$0xff]  ;;  %v280_v36 = vld [vmem:[#allocation5 + $0x108] sm:$0xff]  ;;  %p1804_p5 = scmp.lt.s32.totalorder %s2198_s23, %s1802_s29  ;;  %p1805_p9 = scmp.lt.s32.totalorder %s1803_s5, %s1797_s20 }
  0x72   : > { %1489 = vmatpush1.bf16.msra.mxu0 %v1488_v14  ;;  %1391 = vmatprep.mubr.f32.mxu1 %v245_v26  ;;  %v271_v29 = vld [vmem:[#allocation5 + $0xc0] sm:$0xff]  ;;  %v1502_v34 = vpack.c.bf16 %v281_v32, %v278_v31  ;;  %v277_v35 = vld [vmem:[#allocation5 + $0xf0] sm:$0xff]  ;;  %v284_v37 = vld [vmem:[#allocation5 + $0x128] sm:$0xff]  ;;  %vm452_vm0 = vcmp.lt.s32.totalorder %v2105_v12, 32  ;;  %vm456_vm1 = vcmp.ge.s32.totalorder %v2105_v12, 32  ;;  %vm457_vm2 = vcmp.lt.s32.totalorder %v2105_v12, 64  ;;  %p1800_p3 = pneg %p1799_p1 }
  0x73   : > { %1491 = vmatprep.subr.bf16.mxu0 %v1490_v15  ;;  %v1500_v33 = vpack.c.bf16 %v274_v30, %v271_v29  ;;  %v287_v38 = vld [vmem:[#allocation5 + $0x140] sm:$0xff]  ;;  %v1504_v39 = vpack.c.bf16 %v280_v36, %v277_v35  ;;  %v286_v42 = vld [vmem:[#allocation5 + $0x138] sm:$0xff]  ;;  %v293_v44 = vld [vmem:[#allocation5 + $0x170] sm:$0xff]  ;;  %vm461_vm4 = vcmp.ge.s32.totalorder %v2105_v12, 64  ;;  %vm462_vm5 = vcmp.lt.s32.totalorder %v2105_v12, 96  ;;  %p1806_p12 = por %p1805_p9, %p1804_p5 }
  0x74   : > { %v1506_v40 = vpack.c.bf16 %v287_v38, %v284_v37  ;;  %v283_v41 = vld [vmem:[#allocation5 + $0x120] sm:$0xff]  ;;  %v290_v43 = vld [vmem:[#allocation5 + $0x158] sm:$0xff]  ;;  %v289_v47 = vld [vmem:[#allocation5 + $0x150] sm:$0xff]  ;;  %vm466_vm7 = vcmp.ge.s32.totalorder %v2105_v12, 96 }
  0x75   : > { %v1508_v45 = vpack.c.bf16 %v286_v42, %v283_v41  ;;  %v1510_v46 = vpack.c.bf16 %v293_v44, %v290_v43  ;;  %v292_v48 = vld [vmem:[#allocation5 + $0x168] sm:$0xff]  ;;  %v249_v51 = vld [vmem:[#allocation5 + $0x10] sm:$0xff]  ;;  %v255_v53 = vld [vmem:[#allocation5 + $0x40] sm:$0xff]  ;;  %p1807_p2 = pnand %p1806_p12, %p1800_p3 }
  0x76   : > { %1493 = vmatpush1.bf16.msra.mxu0 %v1492_v20  ;;  %v1512_v49 = vpack.c.bf16 %v292_v48, %v289_v47  ;;  %v246_v50 = vld [vmem:[%s2090_s25 + $0x8] sm:$0xff]  ;;  %v261_v57 = vld [vmem:[#allocation5 + $0x70] sm:$0xff]  ;;  %v267_v60 = vld [vmem:[#allocation5 + $0xa0] sm:$0xff]  ;;  %v472_v48 = vshrl.u32 %v449_v11, 7 }
  0x77   : > { %1495 = vmatprep.subr.bf16.mxu0 %v1494_v21  ;;  %v252_v52 = vld [vmem:[#allocation5 + $0x28] sm:$0xff]  ;;  %v258_v55 = vld [vmem:[#allocation5 + $0x58] sm:$0xff]  ;;  %v273_v63 = vld [vmem:[#allocation5 + $0xd0] sm:$0xff] }
  0x78   : > { %v1514_v54 = vpack.c.bf16 %v252_v52, %v249_v51  ;;  %v1518_v56 = vpack.c.bf16 %v258_v55, %v255_v53  ;;  %v264_v58 = vld [vmem:[#allocation5 + $0x88] sm:$0xff]  ;;  %v270_v61 = vld [vmem:[#allocation5 + $0xb8] sm:$0xff]  ;;  %v279_v2 = vld [vmem:[#allocation5 + $0x100] sm:$0xff]  ;;  %vm474_vm9 = vcmp.ge.s32.totalorder %v472_v48, %v2105_v12 }
  0x79   : > { %v1522_v59 = vpack.c.bf16 %v264_v58, %v261_v57  ;;  %v1526_v62 = vpack.c.bf16 %v270_v61, %v267_v60  ;;  %v282_v3 = vld [vmem:[#allocation5 + $0x118] sm:$0xff]  ;;  %v285_v5 = vld [vmem:[#allocation5 + $0x130] sm:$0xff]  ;;  %v288_v6 = vld [vmem:[#allocation5 + $0x148] sm:$0xff] }
  0x7a   : > { %1497 = vmatpush1.bf16.msra.mxu0 %v1496_v27  ;;  %1515 = vmatprep.subr.bf16.mxu1 %v1514_v54  ;;  %v1534_v4 = vpack.c.bf16 %v282_v3, %v279_v2  ;;  %v1538_v7 = vpack.c.bf16 %v288_v6, %v285_v5  ;;  %v291_v8 = vld [vmem:[#allocation5 + $0x160] sm:$0xff]  ;;  %v294_v9 = vld [vmem:[#allocation5 + $0x178] sm:$0xff]  ;;  %vm2112_vm3 = vmand %vm456_vm1, %vm457_vm2 }
  0x7b   : > { %1499 = vmatprep.subr.bf16.mxu0 %v1498_v28  ;;  %1517 = vmatpush3.bf16.msra.mxu1 %v1514_v54  ;;  %v1542_v10 = vpack.c.bf16 %v294_v9, %v291_v8  ;;  %vm2122_vm6 = vmand %vm461_vm4, %vm462_vm5  ;;  %v680_v22 = vld [vmem:[#allocation7] sm:$0xff]  ;;  %v681_v23 = vld [vmem:[#allocation7 + $0x8] sm:$0xff] }
  0x7c   : > { %1519 = vmatprep.subr.bf16.mxu1 %v1518_v56  ;;  %v682_v24 = vld [vmem:[#allocation7 + $0x10] sm:$0xff]  ;;  %v1550_v25 = vpack.c.bf16 %v681_v23, %v680_v22  ;;  %v684_v28 = vld [vmem:[#allocation7 + $0x20] sm:$0xff]  ;;  %v685_v29 = vld [vmem:[#allocation7 + $0x28] sm:$0xff] }
  0x7d   : > { %v1558_v30 = vpack.c.bf16 %v685_v29, %v684_v28  ;;  %v686_v31 = vld [vmem:[#allocation7 + $0x30] sm:$0xff]  ;;  %v687_v32 = vld [vmem:[#allocation7 + $0x38] sm:$0xff]  ;;  %v689_v35 = vld [vmem:[#allocation7 + $0x48] sm:$0xff] }
  0x7e   : > { %1501 = vmatpush1.bf16.msra.mxu0 %v1500_v33  ;;  %v1562_v33 = vpack.c.bf16 %v687_v32, %v686_v31  ;;  %v690_v37 = vld [vmem:[#allocation7 + $0x50] sm:$0xff]  ;;  %v691_v38 = vld [vmem:[#allocation7 + $0x58] sm:$0xff]  ;;  %v693_v41 = vld [vmem:[#allocation7 + $0x68] sm:$0xff] }
  0x7f   : > { %1503 = vmatprep.subr.bf16.mxu0 %v1502_v34  ;;  %1521 = vmatpush3.bf16.msra.mxu1 %v1518_v56  ;;  %v688_v34 = vld [vmem:[#allocation7 + $0x40] sm:$0xff]  ;;  %v694_v43 = vld [vmem:[#allocation7 + $0x70] sm:$0xff]  ;;  %v695_v44 = vld [vmem:[#allocation7 + $0x78] sm:$0xff] }
  0x80   : > { %1523 = vmatprep.subr.bf16.mxu1 %v1522_v59  ;;  %v1566_v36 = vpack.c.bf16 %v689_v35, %v688_v34 }
  0x82   : > { %1505 = vmatpush1.bf16.msra.mxu0 %v1504_v39  ;;  %v1570_v39 = vpack.c.bf16 %v691_v38, %v690_v37 }
  0x83   : > { %1507 = vmatprep.subr.bf16.mxu0 %v1506_v40  ;;  %1525 = vmatpush3.bf16.msra.mxu1 %v1522_v59  ;;  %v692_v40 = vld [vmem:[#allocation7 + $0x60] sm:$0xff] }
  0x84   : > { %1527 = vmatprep.subr.bf16.mxu1 %v1526_v62  ;;  %v1574_v42 = vpack.c.bf16 %v693_v41, %v692_v40 }
  0x86   : > { %1509 = vmatpush1.bf16.msra.mxu0 %v1508_v45  ;;  %v1578_v45 = vpack.c.bf16 %v695_v44, %v694_v43 }
  0x87   : > { %1511 = vmatprep.subr.bf16.mxu0 %v1510_v46  ;;  %1529 = vmatpush3.bf16.msra.mxu1 %v1526_v62 }
  0x8a   : > { %1513 = vmatpush1.bf16.msra.mxu0 %v1512_v49  ;;  %v473_v49 = vadd.s32 8, %v472_v48 }
  0x8c   : > { %vm475_vm8 = vcmp.ge.s32.totalorder %v473_v49, %v2105_v12 }
  0x8d   : > { %360 = vmatmul.mubr.f32.vlgmr.msra.gmra.mrb[0].mxu0 %v245_v26  ;;  %v683_v26 = vld [vmem:[#allocation7 + $0x18] sm:$0xff] }
  0x8e   : > { %365 = vmatprep.mubr.f32.mxu0 %v1876_v0  ;;  %v276_v0 = vld [vmem:[#allocation5 + $0xe8] sm:$0xff]  ;;  %v1554_v27 = vpack.c.bf16 %v683_v26, %v682_v24 }
  0x8f   : > { %v1530_v1 = vpack.c.bf16 %v276_v0, %v273_v63 }
  0x91   : > { %366 = vmatmul.mubr.f32.gmra.mrb[2].mxu0 %v246_v50  ;;  %1531 = vmatprep.subr.bf16.mxu1 %v1530_v1 }
  0x92   : > { %1533 = vmatpush3.bf16.msra.mxu1 %v1530_v1 }
  0x93   : > { %1535 = vmatprep.subr.bf16.mxu1 %v1534_v4 }
  0x96   : > { %1537 = vmatpush3.bf16.msra.mxu1 %v1534_v4 }
  0x97   : > { %1539 = vmatprep.subr.bf16.mxu1 %v1538_v7 }
  0x9a   : > { %1541 = vmatpush3.bf16.msra.mxu1 %v1538_v7 }
  0x9b   : > { %1543 = vmatprep.subr.bf16.mxu1 %v1542_v10 }
  0x9e   : > { %1545 = vmatpush3.bf16.msra.mxu1 %v1542_v10 }
  0x9f   : > { %1551 = vmatprep.subr.bf16.mxu1 %v1550_v25 }
  0xa1   : > { %1392 = vmatmul.mubr.f32.vlgmr.msra.gmra.mrb[0].mxu1 %v246_v50  ;;  %v1877_v50 = vmov -inf  }
  0xa2   : > { %1553 = vmatpush3.bf16.msra.mxu1 %v1550_v25  ;;  %v477_v51 = vsel %vm475_vm8, 0.0, %v1877_v50  ;;  %v476_v52 = vsel %vm474_vm9, 0.0, %v1877_v50 }
  0xa3   : > { %1555 = vmatprep.subr.bf16.mxu1 %v1554_v27 }
  0xa6   : > { %1557 = vmatpush3.bf16.msra.mxu1 %v1554_v27 }
  0xa7   : > { %1559 = vmatprep.subr.bf16.mxu1 %v1558_v30 }
  0xaa   : > { %1561 = vmatpush3.bf16.msra.mxu1 %v1558_v30 }
  0xab   : > { %1563 = vmatprep.subr.bf16.mxu1 %v1562_v33 }
  0xae   : > { %1565 = vmatpush3.bf16.msra.mxu1 %v1562_v33 }
  0xaf   : > { %1567 = vmatprep.subr.bf16.mxu1 %v1566_v36 }
  0xb2   : > { %1569 = vmatpush3.bf16.msra.mxu1 %v1566_v36 }
  0xb3   : > { %1571 = vmatprep.subr.bf16.mxu1 %v1570_v39 }
  0xb6   : > { %1573 = vmatpush3.bf16.msra.mxu1 %v1570_v39 }
  0xb7   : > { %1575 = vmatprep.subr.bf16.mxu1 %v1574_v42 }
  0xba   : > { %1577 = vmatpush3.bf16.msra.mxu1 %v1574_v42 }
  0xbb   : > { %1579 = vmatprep.subr.bf16.mxu1 %v1578_v45 }
  0xbe   : > { %1581 = vmatpush3.bf16.msra.mxu1 %v1578_v45 }
 0x160   : > { %v361_v13 = vpop.f32.mrb[0].mxu0 }
 0x161   : > { %v447_v14 = vmul.f32 0.088388346, %v361_v13  ;;  %v363_v15 = vpop.f32.mrb[1].mxu0 }
 0x163   : > { %1398 = vmatprep.mubr.msk.f32.mxu0 %vm452_vm0, %v447_v14 }
 0x164   : > { %v367_v16 = vpop.f32.mrb[2].mxu0 }
 0x165   : > { %v369_v17 = vpop.f32.mrb[3].mxu0  ;;  %v448_v19 = vmul.f32 0.088388346, %v367_v16 }
 0x166   : > { %v1546_v18 = vpack.c.bf16 %v369_v17, %v363_v15 }
 0x168   : > { %1547 = vmatprep.subr.bf16.mxu0 %v1546_v18 }
 0x169   : > { %1549 = vmatpush3.bf16.xpose.msra.mxu0 %v1546_v18 }
 0x170   : > { %1399 = vmatmul.mubr.msk.f32.vlgmr.msra.gmra.mrb[4].mxu0 %vm452_vm0, %v448_v19 }
 0x171   : > { %1401 = vmatprep.mubr.msk.f32.mxu0 %vm2112_vm3, %v447_v14 }
 0x174   : > { %1402 = vmatmul.mubr.msk.f32.gmra.mrb[6].mxu0 %vm2112_vm3, %v448_v19  ;;  %v1393_v46 = vpop.f32.mrb[0].mxu1 }
 0x175   : > { %1404 = vmatprep.mubr.msk.f32.mxu0 %vm2122_vm6, %v447_v14  ;;  %v438_v47 = vpop.f32.mrb[1].mxu1 }
 0x176   : > { %1442 = vmatprep.mubr.msk.f32.mxu1 %vm452_vm0, %v438_v47 }
 0x177   : > { %1443 = vmatmul.mubr.msk.f32.vlgmr.msra.gmra.mrb[2].mxu1 %vm452_vm0, %v1393_v46 }
 0x178   : > { %1405 = vmatmul.mubr.msk.f32.gmra.mrb[8].mxu0 %vm2122_vm6, %v448_v19  ;;  %1445 = vmatprep.mubr.msk.f32.mxu1 %vm2112_vm3, %v438_v47 }
 0x179   : > { %1407 = vmatprep.mubr.msk.f32.mxu0 %vm466_vm7, %v447_v14 }
 0x17b   : > { %1446 = vmatmul.mubr.msk.f32.gmra.mrb[4].mxu1 %vm2112_vm3, %v1393_v46 }
 0x17c   : > { %1408 = vmatmul.mubr.msk.f32.gmra.mrb[10].mxu0 %vm466_vm7, %v448_v19  ;;  %1448 = vmatprep.mubr.msk.f32.mxu1 %vm2122_vm6, %v438_v47 }
 0x17f   : > { %1449 = vmatmul.mubr.msk.f32.gmra.mrb[6].mxu1 %vm2122_vm6, %v1393_v46 }
 0x180   : > { %1451 = vmatprep.mubr.msk.f32.mxu1 %vm466_vm7, %v438_v47 }
 0x183   : > { %1452 = vmatmul.mubr.msk.f32.gmra.mrb[8].mxu1 %vm466_vm7, %v1393_v46 }
 0x243   : > { %v1400_v53 = vpop.f32.mrb[4].mxu0 }
 0x244   : > { %v550_v54 = vadd.f32 %v1400_v53, %v477_v51  ;;  %v544_v55 = vpop.f32.mrb[5].mxu0 }
 0x245   : > { %v545_v56 = vadd.f32 %v544_v55, %v476_v52 }
 0x246   : > { %v587_v0 = vsel %vm583_vm10, %v550_v54, -inf }
 0x247   : > { %v1403_v57 = vpop.f32.mrb[6].mxu0  ;;  %v584_v58 = vsel %vm583_vm10, %v545_v56, -inf }
 0x248   : > { %v560_v59 = vadd.f32 %v1403_v57, %v477_v51  ;;  %v554_v60 = vpop.f32.mrb[7].mxu0  ;;  %585 = vmax.xlane.f32.xlu1 %v584_v58 }
 0x249   : > { %v555_v61 = vadd.f32 %v554_v60, %v476_v52 }
 0x24a   : > { %v593_v6 = vsel %vm583_vm10, %v560_v59, -inf  ;;  %v1444_v13 = vpop.f32.mrb[2].mxu1 }
 0x24b   : > { %v1406_v62 = vpop.f32.mrb[8].mxu0  ;;  %v590_v63 = vsel %vm583_vm10, %v555_v61, -inf  ;;  %v762_v14 = vpop.f32.mrb[3].mxu1 }
 0x24c   : > { %v570_v1 = vadd.f32 %v1406_v62, %v477_v51  ;;  %v564_v2 = vpop.f32.mrb[9].mxu0  ;;  %591 = vmax.xlane.f32.xlu0 %v590_v63  ;;  %588 = vmax.xlane.f32.xlu1 %v587_v0  ;;  %v2164_v15 = vpack.c.bf16 %v1444_v13, %v762_v14 }
 0x24d   : > { %v565_v3 = vadd.f32 %v564_v2, %v476_v52 }
 0x24e   : > { %v599_v4 = vsel %vm583_vm10, %v570_v1, -inf  ;;  %v1447_v16 = vpop.f32.mrb[4].mxu1 }
 0x24f   : > { %v1409_v5 = vpop.f32.mrb[10].mxu0  ;;  %v596_v11 = vsel %vm583_vm10, %v565_v3, -inf  ;;  %v772_v17 = vpop.f32.mrb[5].mxu1 }
 0x250   : > { %v580_v7 = vadd.f32 %v1409_v5, %v477_v51  ;;  %v574_v8 = vpop.f32.mrb[11].mxu0  ;;  %594 = vmax.xlane.f32.xlu0 %v593_v6  ;;  %600 = vmax.xlane.f32.xlu1 %v599_v4  ;;  %v1582_v18 = vpack.c.bf16 %v1447_v16, %v772_v17 }
 0x251   : > { %v575_v9 = vadd.f32 %v574_v8, %v476_v52 }
 0x252   : > { %v605_v10 = vsel %vm583_vm10, %v580_v7, -inf  ;;  %v1450_v20 = vpop.f32.mrb[6].mxu1  ;;  %1583 = vmatprep.subr.bf16.mxu0 %v1582_v18 }
 0x253   : > { %v602_v12 = vsel %vm583_vm10, %v575_v9, -inf  ;;  %v782_v21 = vpop.f32.mrb[7].mxu1  ;;  %1585 = vmatpush3.bf16.msra.mxu0 %v1582_v18 }
 0x254   : > { %597 = vmax.xlane.f32.xlu0 %v596_v11  ;;  %606 = vmax.xlane.f32.xlu1 %v605_v10  ;;  %v2166_v23 = vpack.c.bf16 %v1450_v20, %v782_v21 }
 0x255   : > { %1587 = vmatprep.subr.bf16.mxu0 %v2164_v15 }
 0x256   : > { %v1453_v27 = vpop.f32.mrb[8].mxu1 }
 0x257   : > { %v792_v28 = vpop.f32.mrb[9].mxu1 }
 0x258   : > { %603 = vmax.xlane.f32.xlu0 %v602_v12  ;;  %v2169_v32 = vpack.c.bf16 %v1453_v27, %v792_v28 }
 0x2d5   : > { %v586_v19 = vpop.xlane.xlu1 %585 }
 0x2d6   : > { %v608_v22 = vsub.f32 %v545_v56, %v586_v19 }
 0x2d8   : > { %v616_v29 = vmul.f32 1.442695, %v608_v22 }
 0x2d9   : > { %v592_v24 = vpop.xlane.xlu0 %591  ;;  %v589_v25 = vpop.xlane.xlu1 %588 }
 0x2da   : > { %v610_v26 = vsub.f32 %v555_v61, %v592_v24  ;;  %v609_v31 = vsub.f32 %v550_v54, %v589_v25 }
 0x2dc   : > { %v620_v30 = vmul.f32 1.442695, %v610_v26  ;;  %v618_v36 = vmul.f32 1.442695, %v609_v31 }
 0x2dd   : > { %v595_v33 = vpop.xlane.xlu0 %594  ;;  %v601_v34 = vpop.xlane.xlu1 %600 }
 0x2de   : > { %1679 = vpow2.f32 %v620_v30  ;;  %v611_v35 = vsub.f32 %v560_v59, %v595_v33  ;;  %v613_v38 = vsub.f32 %v570_v1, %v601_v34 }
 0x2df   : > { %1681 = vpow2.f32 %v616_v29 }
 0x2e0   : > { %v622_v37 = vmul.f32 1.442695, %v611_v35  ;;  %v626_v42 = vmul.f32 1.442695, %v613_v38 }
 0x2e1   : > { %v598_v39 = vpop.xlane.xlu0 %597  ;;  %v607_v40 = vpop.xlane.xlu1 %606 }
 0x2e2   : > { %1683 = vpow2.f32 %v622_v37  ;;  %v612_v41 = vsub.f32 %v565_v3, %v598_v39  ;;  %v615_v44 = vsub.f32 %v580_v7, %v607_v40 }
 0x2e3   : > { %1685 = vpow2.f32 %v618_v36 }
 0x2e4   : > { %v624_v43 = vmul.f32 1.442695, %v612_v41  ;;  %v630_v48 = vmul.f32 1.442695, %v615_v44 }
 0x2e5   : > { %v604_v45 = vpop.xlane.xlu0 %603 }
 0x2e6   : > { %1687 = vpow2.f32 %v624_v43  ;;  %v614_v46 = vsub.f32 %v575_v9, %v604_v45 }
 0x2e7   : > { %1689 = vpow2.f32 %v626_v42 }
 0x2e8   : > { %v1680_v47 = vpop.eup %1679  ;;  %v628_v49 = vmul.f32 1.442695, %v614_v46 }
 0x2e9   : > { %v638_v50 = vsel %vm583_vm10, %v1680_v47, 0.0  ;;  %v1682_v51 = vpop.eup %1681 }
 0x2ea   : > { %1691 = vpow2.f32 %v628_v49  ;;  %639 = vadd.xlane.f32.xlu0 %v638_v50  ;;  %v632_v54 = vsel %vm583_vm10, %v1682_v51, 0.0 }
 0x2eb   : > { %1693 = vpow2.f32 %v630_v48 }
 0x2ec   : > { %v1684_v52 = vpop.eup %1683 }
 0x2ed   : > { %v641_v53 = vsel %vm583_vm10, %v1684_v52, 0.0  ;;  %v1686_v55 = vpop.eup %1685 }
 0x2ee   : > { %642 = vadd.xlane.f32.xlu1 %v641_v53  ;;  %633 = vadd.xlane.f32.xlu0 %v632_v54  ;;  %v635_v58 = vsel %vm583_vm10, %v1686_v55, 0.0 }
 0x2f0   : > { %v1688_v56 = vpop.eup %1687 }
 0x2f1   : > { %v644_v57 = vsel %vm583_vm10, %v1688_v56, 0.0  ;;  %v1690_v59 = vpop.eup %1689 }
 0x2f2   : > { %645 = vadd.xlane.f32.xlu0 %v644_v57  ;;  %636 = vadd.xlane.f32.xlu1 %v635_v58  ;;  %v647_v62 = vsel %vm583_vm10, %v1690_v59, 0.0 }
 0x2f4   : > { %v1692_v60 = vpop.eup %1691 }
 0x2f5   : > { %v650_v61 = vsel %vm583_vm10, %v1692_v60, 0.0  ;;  %v1694_v63 = vpop.eup %1693 }
 0x2f6   : > { %651 = vadd.xlane.f32.xlu0 %v650_v61  ;;  %648 = vadd.xlane.f32.xlu1 %v647_v62  ;;  %v653_v0 = vsel %vm583_vm10, %v1694_v63, 0.0 }
 0x2fa   : > { %654 = vadd.xlane.f32.xlu1 %v653_v0 }
 0x377   : > { %v640_v1 = vpop.xlane.xlu0 %639 }
 0x378   : > { %1695 = vrcp.f32 %v640_v1 }
 0x37b   : > { %v634_v2 = vpop.xlane.xlu0 %633  ;;  %v643_v3 = vpop.xlane.xlu1 %642 }
 0x37c   : > { %1697 = vrcp.f32 %v634_v2 }
 0x37d   : > { %1699 = vrcp.f32 %v643_v3 }
 0x37f   : > { %v637_v4 = vpop.xlane.xlu1 %636  ;;  %v646_v5 = vpop.xlane.xlu0 %645 }
 0x380   : > { %1701 = vrcp.f32 %v637_v4 }
 0x381   : > { %1703 = vrcp.f32 %v646_v5 }
 0x382   : > { %v1696_v6 = vpop.eup %1695 }
 0x383   : > { %v666_v7 = vmul.f32 %v1696_v6, %v1680_v47  ;;  %v649_v12 = vpop.xlane.xlu1 %648  ;;  %v652_v13 = vpop.xlane.xlu0 %651 }
 0x384   : > { %1705 = vrcp.f32 %v649_v12 }
 0x385   : > { %1458 = vmatprep.mubr.msk.f32.mxu0 %vm583_vm10, %v666_v7  ;;  %1707 = vrcp.f32 %v652_v13 }
 0x386   : > { %v1698_v8 = vpop.eup %1697 }
 0x387   : > { %v1700_v9 = vpop.eup %1699  ;;  %v664_v10 = vmul.f32 %v1698_v8, %v1682_v51  ;;  %v655_v18 = vpop.xlane.xlu1 %654 }
 0x388   : > { %v667_v11 = vmul.f32 %v1700_v9, %v1684_v52  ;;  %1709 = vrcp.f32 %v655_v18 }
 0x38a   : > { %1459 = vmatmul.mubr.msk.f32.vlgmr.msra.gmra.mrb[12].mxu0 %vm583_vm10, %v667_v11  ;;  %v1702_v14 = vpop.eup %1701 }
 0x38b   : > { %1589 = vmatpush3.bf16.msra.mxu0 %v2164_v15  ;;  %1465 = vmatprep.mubr.msk.f32.mxu0 %vm583_vm10, %v664_v10  ;;  %v1704_v16 = vpop.eup %1703  ;;  %v665_v17 = vmul.f32 %v1702_v14, %v1686_v55 }
 0x38c   : > { %1591 = vmatprep.subr.bf16.mxu0 %v2166_v23  ;;  %v668_v19 = vmul.f32 %v1704_v16, %v1688_v56 }
 0x38e   : > { %v1706_v15 = vpop.eup %1705 }
 0x38f   : > { %v1708_v20 = vpop.eup %1707  ;;  %v669_v21 = vmul.f32 %v1706_v15, %v1690_v59 }
 0x390   : > { %v670_v22 = vmul.f32 %v1708_v20, %v1692_v60 }
 0x392   : > { %1466 = vmatmul.mubr.msk.f32.vlgmr.msra.gmra.mrb[12].mxu0 %vm583_vm10, %v665_v17  ;;  %v1710_v24 = vpop.eup %1709 }
 0x393   : > { %1593 = vmatpush3.bf16.msra.mxu0 %v2166_v23  ;;  %1472 = vmatprep.mubr.msk.f32.mxu0 %vm583_vm10, %v668_v19  ;;  %v671_v25 = vmul.f32 %v1710_v24, %v1694_v63  ;;  %v1283_v23 = vld [vmem:[%s2250_s3] ss:$0 sm:$0xff] }
 0x394   : > { %1595 = vmatprep.subr.bf16.mxu0 %v2169_v32 }
 0x39a   : > { %1473 = vmatmul.mubr.msk.f32.vlgmr.msra.gmra.mrb[12].mxu0 %vm583_vm10, %v669_v21 }
 0x39b   : > { %1597 = vmatpush3.bf16.msra.mxu0 %v2169_v32  ;;  %1479 = vmatprep.mubr.msk.f32.mxu0 %vm583_vm10, %v670_v22 }
 0x3a2   : > { %1480 = vmatmul.mubr.msk.f32.vlgmr.msra.gmra.mrb[12].mxu0 %vm583_vm10, %v671_v25 }
 0x475   : > { %v1481_v26 = vpop.f32.mrb[12].mxu0 }
 0x476   : > { %v1137_v27 = vadd.f32 %v1481_v26, %v1283_v23  ;;  %v1118_v28 = vpop.f32.mrb[13].mxu0 }
 0x477   : > { %v1136_v29 = vadd.f32 %v1283_v23, %v1118_v28 }
 0x478   : > { %1139 = vst [vmem:[%s244_s21 + $0x8] sm:$0xff] %v1137_v27 }
 0x479   : > { %1138 = vst [vmem:[%s244_s21] sm:$0xff] %v1136_v29 }
 0x47a   : > { %1810 = shalt.err (!%p1807_p2)
}
 0x47b   : > { %s1811_s12 = scalar_lea.hbm %s2203_s28, 256  ;;  %s1815_s25 = scalar_lea.hbm %s2251_s4, 512 }
 0x47c   : > { %p1812_p13 = scmp.ne.s32.totalorder %s2203_s28, %s1811_s12  ;;  %p1816_p4 = scmp.lt.u32.totalorder %s2203_s28, %s2251_s4 }
 0x47d   : > { %p1817_p7 = scmp.lt.u32.totalorder %s1815_s25, %s1811_s12  ;;  %p1819_p11 = scmp.lt.u32.totalorder %s1811_s12, %s2203_s28 }
 0x47e   : > { %p1813_p6 = pnand %p1812_p13, %p2269_p0 }
 0x47f   : > { %p1818_p8 = por %p1817_p7, %p1816_p4 }
 0x480   : > { %p1814_p10 = pneg %p1813_p6 }
 0x481   : > { %p1820_p1 = por %p1819_p11, %p1818_p8 }
 0x483   : > { %p1821_p3 = pnand %p1820_p1, %p1814_p10 }
 0x485   : > { %1824 = shalt.err (!%p1821_p3)
}
 0x486   : > { %s1879_s8 = smov 128   ;;  %s1880_s30 = smov 8  }
 0x487   : > { %1614 = dma.vmem_to_hbm [thread:$0]  (%p2269_p0), %s2198_s23, 256, %s2203_s28, %s1141_s27, %s1879_s8, %s1879_s8, %s1880_s30  }
 0x488 PF: > { %s1169_s6 = sand.u32 1, %s1855_s15   ;;  %p2270_p5 = scmp.ne.s32.totalorder %s2256_s22, 0 }
 0x489   : > { %p2271_p9 = scmp.ge.s32.totalorder %s1867_s18, 2  ;;  %s1170_s9 = scalar_lea.sflag [#allocation4], %s1169_s6 }
 0x48b   : > { %p1628_p12 = pnand %p2271_p9, %p2270_p5 }
 0x48d   : > { %1850 = dma.done.wait (!%p1628_p12), %s1170_s9, 256  }
 0x48e   : > { %1852 = vsyncadd (!%p1628_p12), %s1170_s9, 4294967040  ;;  %p18_p2 = scmp.ge.s32.totalorder %s2019_s11, 4   ;;  %s2272_s15 = smov %s1859_s16 }
 0x48f   : > { %s2273_s16 = smov %s1863_s17  ;;  %s2274_s17 = smov %s2028_s14 }
 0x490   : > { %s2275_s18 = smov %s2019_s11  ;;  %20 = sbr.rel (!%p18_p2) target bundleno = 6 (0x6), region = 89 }
 0x497   :  { %1175 = vsyncpa [#allocation3], 1 }
 0x498   :  { %1177 = vsyncpa [#allocation3 + $0x1], 1 }
 0x499   :  { %1178 = vsyncpa [#allocation6], 1 }
 0x49a   :  { %1179 = vsyncpa [#allocation4], 1 }
 0x49b   :  { %1181 = vsyncpa [#allocation4 + $0x1], 1 }

</bundles_post_ra>
